<compile_context>
chip_gen: v7x
topology: tpu7x:2x2x1
jax: 0.10.0
libtpu: 0.0.40
codegen_flags: <defaults>
</compile_context>

<pallas_src>
import functools

import jax
import jax.numpy as jnp
import numpy as np
from jax.experimental import pallas as pl
from jax.experimental.pallas import tpu as pltpu


def _focal_loss_kernel(logits_ref, labels_ref, out_ref, *, gamma, ignore_lb,
                       hw, tpx, mask_tail):
    x = logits_ref[0].astype(jnp.float32)          # (C, tpx) classes on sublanes
    lbl = labels_ref[0].astype(jnp.int32)          # (1, tpx) widened in-register

    valid = lbl != ignore_lb                       # (1, tpx) bool
    if mask_tail:
        # Partial last block: mask pixels past H*W (garbage columns) instead of
        # padding the logits in HBM.
        pix = (pl.program_id(1) * tpx
               + jax.lax.broadcasted_iota(jnp.int32, lbl.shape, 1))
        valid = jnp.logical_and(valid, pix < hw)
    safe_lbl = jnp.where(valid, lbl, 0)

    # Numerically stable log-softmax pieces over the class (sublane) axis.
    m = jnp.max(x, axis=0, keepdims=True)          # (1, tpx)
    shifted = x - m                                # (C, tpx)
    denom = jnp.sum(jnp.exp(shifted), axis=0, keepdims=True)   # (1, tpx)
    log_denom = jnp.log(denom)                     # (1, tpx)

    # Picked-class gather: select-then-reduce (one vsel over the (C,tpx) block).
    class_ids = jax.lax.broadcasted_iota(jnp.int32, x.shape, 0)       # (C, tpx)
    picked_shifted = jnp.sum(
        jnp.where(class_ids == safe_lbl, shifted, 0.0),
        axis=0, keepdims=True)                                        # (1, tpx)

    # Focal term only for the picked class.
    picked_logsm = picked_shifted - log_denom      # log_softmax at label class
    picked_p = jnp.exp(picked_logsm)               # softmax prob at label class
    d = 1.0 - picked_p
    if gamma == 2.0:
        factor = d * d                             # VPU multiply, no EUP pow
    elif gamma == 1.0:
        factor = d
    elif gamma == 0.0:
        factor = jnp.ones_like(d)
    else:
        factor = jnp.power(d, gamma)               # (1, tpx) column only

    # Select (not multiply) so garbage tail columns / NaNs cannot propagate.
    contrib = jnp.where(valid, -(factor * picked_logsm), 0.0)         # (1, tpx)

    # Single merged (1, 1, 2) partials block: [loss_sum, valid_count].
    out_ref[0, :, 0:1] = jnp.sum(contrib, axis=1, keepdims=True)
    out_ref[0, :, 1:2] = jnp.sum(valid.astype(jnp.float32), axis=1, keepdims=True)


def softmax_focal_loss(logits_nchw, labels_nhw, *, gamma=2.0, ignore_lb=255,
                       tpx=None):
    N, C, H, W = logits_nchw.shape
    HW = H * W
    itemsize = jnp.dtype(logits_nchw.dtype).itemsize

    # Keep narrow integer labels (uint8/int8/int16/int32) in HBM as-is; widen
    # inside the kernel. Only non-integer / 64-bit labels get cast here.
    lbl_dtype = jnp.dtype(labels_nhw.dtype)
    if (not jnp.issubdtype(lbl_dtype, jnp.integer)) or lbl_dtype.itemsize > 4:
        labels_nhw = labels_nhw.astype(jnp.int32)
    lbl_itemsize = jnp.dtype(labels_nhw.dtype).itemsize

    # Lane tile: ~8 MiB of logits per pipeline buffer, multiple of 128 lanes,
    # clamped to the lane-padded spatial extent. (16K-pixel cap removed.)
    hw_pad = ((HW + 127) // 128) * 128
    if tpx is None:
        target_bytes = 8 << 20
        tpx = (target_bytes // max(1, C * itemsize)) // 128 * 128
        tpx = max(128, tpx)
    else:
        tpx = max(128, (int(tpx) // 128) * 128)
    tpx = min(tpx, hw_pad)
    T = pl.cdiv(HW, tpx)                  # pixel tiles per image
    mask_tail = (HW % tpx) != 0           # partial last block -> in-kernel mask

    # Native NCHW -> (N, C, HW): pure reshape, no transpose, no pad, no copy.
    x = logits_nchw.reshape(N, C, HW)
    lbl = labels_nhw.reshape(N, 1, HW)

    kernel = functools.partial(_focal_loss_kernel, gamma=float(gamma),
                               ignore_lb=int(ignore_lb), hw=HW, tpx=tpx,
                               mask_tail=mask_tail)

    # VMEM budget: double-buffered logits + labels blocks + headroom.
    # Raised above the v5e 16 MiB scoped default, capped at 32 MiB for v7x
    # (64 MiB VMEM / 32 MiB scoped default), never below the minimum need.
    blk_bytes = tpx * C * itemsize + tpx * lbl_itemsize
    vmem_need = 2 * blk_bytes + (2 << 20)
    vmem_limit = max(vmem_need, 16 << 20)
    vmem_limit = min(vmem_limit, 32 << 20)
    vmem_limit = int(max(vmem_limit, vmem_need))

    parts = pl.pallas_call(
        kernel,
        out_shape=jax.ShapeDtypeStruct((N, T, 2), jnp.float32),
        grid_spec=pltpu.PrefetchScalarGridSpec(
            num_scalar_prefetch=0,
            grid=(N, T),                              # 2-D grid: no div/mod
            in_specs=[
                pl.BlockSpec((1, C, tpx), lambda n, t: (n, 0, t)),
                pl.BlockSpec((1, 1, tpx), lambda n, t: (n, 0, t)),
            ],
            out_specs=pl.BlockSpec((1, 1, 2), lambda n, t: (n, t, 0)),
        ),
        compiler_params=pltpu.CompilerParams(
            dimension_semantics=("parallel", "parallel"),
            vmem_limit_bytes=vmem_limit),
    )(x, lbl)

    # NLLLoss(reduction='mean', ignore_index): mean over valid pixels.
    return jnp.sum(parts[..., 0]) / jnp.sum(parts[..., 1])


def _reference_loss(logits, labels, gamma, ignore_lb):
    labels = labels.astype(jnp.int32)
    sm = jax.nn.softmax(logits, axis=1)
    log_sm = jax.nn.log_softmax(logits, axis=1)
    weighted = jnp.power(1.0 - sm, gamma) * log_sm            # (N, C, H, W)
    valid = labels != ignore_lb
    safe = jnp.where(valid, labels, 0)
    picked = jnp.take_along_axis(weighted, safe[:, None, :, :], axis=1)[:, 0]
    return -jnp.sum(jnp.where(valid, picked, 0.0)) / jnp.sum(valid)


def _run_case(seed, N, C, H, W, label_dtype, gamma=2.0, ignore_lb=255, tpx=None):
    key = jax.random.PRNGKey(seed)
    k_logits, k_labels, k_mask = jax.random.split(key, 3)
    logits = jax.random.normal(k_logits, (N, C, H, W), dtype=jnp.float32)
    labels = jax.random.randint(k_labels, (N, H, W), 0, C, dtype=jnp.int32)
    ignore_mask = jax.random.uniform(k_mask, (N, H, W)) < 0.1
    labels = jnp.where(ignore_mask, jnp.int32(ignore_lb), labels)
    labels = labels.astype(label_dtype)           # narrow labels stream as-is

    loss = softmax_focal_loss(logits, labels, gamma=gamma, ignore_lb=ignore_lb,
                              tpx=tpx)
    loss = jax.block_until_ready(loss)
    ref = _reference_loss(logits, labels, gamma, ignore_lb)
    np.testing.assert_allclose(np.asarray(loss), np.asarray(ref),
                               rtol=1e-5, atol=1e-5)


if __name__ == "__main__":
    # Case 1: canonical small shape, uint8 labels (narrow HBM stream).
    _run_case(0, N=2, C=4, H=16, W=16, label_dtype=jnp.uint8)
    # Case 2: H*W not divisible by 128 -> exercises the in-kernel tail mask
    # (no jnp.pad HBM pass), int32 labels path.
    _run_case(1, N=2, C=5, H=15, W=15, label_dtype=jnp.int32)
    # Case 3: forced small tile -> multiple pixel tiles per image + tail mask,
    # exercises the (N, T, 2) merged-partials output with T > 1.
    _run_case(2, N=1, C=4, H=20, W=20, label_dtype=jnp.uint8, tpx=128)

    print("KERNEL_OK")
</pallas_src>

<mosaic_0001>
module attributes {stable_mosaic.version = 11 : i64} {
  func.func @_focal_loss_kernel(%arg0: i32, %arg1: i32, %arg2: memref<1x4x256xf32, #tpu.memory_space<vmem>>, %arg3: memref<1x1x256xi8, #tpu.memory_space<vmem>>, %arg4: memref<1x1x2xf32, #tpu.memory_space<vmem>>) attributes {dimension_semantics = [#tpu.dimension_semantics<parallel>, #tpu.dimension_semantics<parallel>], iteration_bounds = array<i64: 2, 1>, scalar_prefetch = 0 : i64, scratch_operands = 0 : i64, tpu.core_type = #tpu.core_type<tc>, window_params = [{transform_indices = @transform_0, window_bounds = array<i64: 1, 4, 256>}, {transform_indices = @transform_1, window_bounds = array<i64: 1, 1, 256>}, {transform_indices = @transform_2, window_bounds = array<i64: 1, 1, 2>}]} {
    %c0 = arith.constant 0 : index
    %c0_0 = arith.constant 0 : index
    %c0_1 = arith.constant 0 : index
    %0 = vector.load %arg2[%c0, %c0_0, %c0_1] : memref<1x4x256xf32, #tpu.memory_space<vmem>>, vector<1x4x256xf32>
    %1 = vector.shape_cast %0 : vector<1x4x256xf32> to vector<4x256xf32>
    %c0_2 = arith.constant 0 : index
    %c0_3 = arith.constant 0 : index
    %c0_4 = arith.constant 0 : index
    %2 = vector.load %arg3[%c0_2, %c0_3, %c0_4] : memref<1x1x256xi8, #tpu.memory_space<vmem>>, vector<1x1x256xi8>
    %3 = vector.shape_cast %2 : vector<1x1x256xi8> to vector<1x256xi8>
    %4 = arith.extui %3 : vector<1x256xi8> to vector<1x256xi32>
    %c255_i32 = arith.constant 255 : i32
    %5 = vector.broadcast %c255_i32 : i32 to vector<1x256xi32>
    %6 = arith.cmpi ne, %4, %5 : vector<1x256xi32>
    %c0_i32 = arith.constant 0 : i32
    %7 = vector.broadcast %c0_i32 : i32 to vector<1x256xi32>
    %8 = arith.select %6, %4, %7 : vector<1x256xi1>, vector<1x256xi32>
    %cst = arith.constant dense<0xFF800000> : vector<256xf32>
    %9 = vector.multi_reduction <maximumf>, %1, %cst [0] : vector<4x256xf32> to vector<256xf32>
    %10 = vector.shape_cast %9 : vector<256xf32> to vector<1x256xf32>
    %11 = vector.broadcast %10 : vector<1x256xf32> to vector<4x256xf32>
    %12 = arith.subf %1, %11 : vector<4x256xf32>
    %13 = math.exp %12 : vector<4x256xf32>
    %cst_5 = arith.constant dense<0.000000e+00> : vector<256xf32>
    %14 = vector.multi_reduction <add>, %13, %cst_5 [0] : vector<4x256xf32> to vector<256xf32>
    %15 = vector.shape_cast %14 : vector<256xf32> to vector<1x256xf32>
    %16 = math.log %15 : vector<1x256xf32>
    %17 = tpu.iota {dimensions = array<i32: 0>} : vector<4x256xi32>
    %18 = vector.broadcast %8 : vector<1x256xi32> to vector<4x256xi32>
    %19 = arith.cmpi eq, %17, %18 : vector<4x256xi32>
    %cst_6 = arith.constant 0.000000e+00 : f32
    %20 = vector.broadcast %cst_6 : f32 to vector<4x256xf32>
    %21 = arith.select %19, %12, %20 : vector<4x256xi1>, vector<4x256xf32>
    %cst_7 = arith.constant dense<0.000000e+00> : vector<256xf32>
    %22 = vector.multi_reduction <add>, %21, %cst_7 [0] : vector<4x256xf32> to vector<256xf32>
    %23 = vector.shape_cast %22 : vector<256xf32> to vector<1x256xf32>
    %24 = arith.subf %23, %16 : vector<1x256xf32>
    %25 = math.exp %24 : vector<1x256xf32>
    %cst_8 = arith.constant 1.000000e+00 : f32
    %26 = vector.broadcast %cst_8 : f32 to vector<1x256xf32>
    %27 = arith.subf %26, %25 : vector<1x256xf32>
    %28 = arith.mulf %27, %27 : vector<1x256xf32>
    %29 = arith.mulf %28, %24 : vector<1x256xf32>
    %cst_9 = arith.constant 0.000000e+00 : f32
    %30 = vector.broadcast %cst_9 : f32 to vector<1x256xf32>
    %31 = arith.subf %30, %29 : vector<1x256xf32>
    %cst_10 = arith.constant 0.000000e+00 : f32
    %32 = vector.broadcast %cst_10 : f32 to vector<1x256xf32>
    %33 = arith.select %6, %31, %32 : vector<1x256xi1>, vector<1x256xf32>
    %cst_11 = arith.constant dense<0.000000e+00> : vector<1xf32>
    %34 = vector.multi_reduction <add>, %33, %cst_11 [1] : vector<1x256xf32> to vector<1xf32>
    %35 = vector.shape_cast %34 : vector<1xf32> to vector<1x1xf32>
    %c0_12 = arith.constant 0 : index
    %c0_13 = arith.constant 0 : index
    %c0_14 = arith.constant 0 : index
    %36 = vector.load %arg4[%c0_12, %c0_13, %c0_14] : memref<1x1x2xf32, #tpu.memory_space<vmem>>, vector<1x1x1xf32>
    %37 = vector.shape_cast %36 : vector<1x1x1xf32> to vector<1x1xf32>
    %38 = vector.shape_cast %35 : vector<1x1xf32> to vector<1x1x1xf32>
    tpu.vector_store %arg4[%c0_12, %c0_13, %c0_14], %38 {strides = array<i32>} : memref<1x1x2xf32, #tpu.memory_space<vmem>>, vector<1x1x1xf32>,
    %39 = arith.extui %6 : vector<1x256xi1> to vector<1x256xi32>
    %40 = arith.sitofp %39 : vector<1x256xi32> to vector<1x256xf32>
    %cst_15 = arith.constant dense<0.000000e+00> : vector<1xf32>
    %41 = vector.multi_reduction <add>, %40, %cst_15 [1] : vector<1x256xf32> to vector<1xf32>
    %42 = vector.shape_cast %41 : vector<1xf32> to vector<1x1xf32>
    %c0_16 = arith.constant 0 : index
    %c0_17 = arith.constant 0 : index
    %c1 = arith.constant 1 : index
    %43 = vector.load %arg4[%c0_16, %c0_17, %c1] : memref<1x1x2xf32, #tpu.memory_space<vmem>>, vector<1x1x1xf32>
    %44 = vector.shape_cast %43 : vector<1x1x1xf32> to vector<1x1xf32>
    %45 = vector.shape_cast %42 : vector<1x1xf32> to vector<1x1x1xf32>
    tpu.vector_store %arg4[%c0_16, %c0_17, %c1], %45 {strides = array<i32>} : memref<1x1x2xf32, #tpu.memory_space<vmem>>, vector<1x1x1xf32>,
    return
  }
  func.func @transform_0(%arg0: i32, %arg1: i32) -> (i32, i32, i32) {
    %c0_i32 = arith.constant 0 : i32
    %c0_i32_0 = arith.constant 0 : i32
    return %arg0, %c0_i32, %arg1 : i32, i32, i32
  }
  func.func @transform_1(%arg0: i32, %arg1: i32) -> (i32, i32, i32) {
    %c0_i32 = arith.constant 0 : i32
    %c0_i32_0 = arith.constant 0 : i32
    return %arg0, %c0_i32, %arg1 : i32, i32, i32
  }
  func.func @transform_2(%arg0: i32, %arg1: i32) -> (i32, i32, i32) {
    %c0_i32 = arith.constant 0 : i32
    %c0_i32_0 = arith.constant 0 : i32
    return %arg0, %arg1, %c0_i32 : i32, i32, i32
  }
}

</mosaic_0001>

<bundles_post_ra>
// kernel: tpu_custom_call.1
= control target key start
LH: loop header
LB: loop body
LE: loop exit
PB: predicated region body
PF: predicated region fallthrough
CT: control target
= control target key end

     0   :  { %7 = vsyncpa [#allocation3], 0  ;;  %s894_s0 = inlined_call_operand.hbm [shape: f32[2,4,256], index: 0, kind: input, shape index: {}]   ;;  %s895_s1 = inlined_call_operand.vmem [shape: u8[2,1,256], index: 1, kind: input, shape index: {}]   ;;  %s896_s2 = inlined_call_operand.hbm [shape: f32[2,1,2], index: 2, kind: output, shape index: {}]  }
   0x1   :  { %9 = vsyncpa [#allocation3 + $0x1], 0 }
   0x2   :  { %10 = vsyncpa [#allocation4], 0 }
   0x3   :  { %12 = vsyncpa [#allocation4 + $0x1], 0  ;;  %s688_s9 = smov 0   ;;  %s690_s10 = smov 0  }
   0x4   :  { %s692_s11 = smov 0   ;;  %s694_s12 = smov 0  }
   0x5   :  { %s696_s13 = smov 0   ;;  %s698_s14 = smov 0  }
   0x6 LB: > { %s467_s15 = sadd.s32 4294967295, %s668_s14   ;;  %s468_s16 = sadd.s32 4294967294, %s668_s14   ;;  %s668_s14 = sphi %s698_s14, %s18_s14   ;;  %s664_s13 = sphi %s696_s13, %s912_s13   ;;  %s660_s12 = sphi %s694_s12, %s911_s12   ;;  %s656_s11 = sphi %s692_s11, %s910_s11   ;;  %s652_s10 = sphi %s690_s10, %s909_s10   ;;  %s648_s9 = sphi %s688_s9, %s908_s9  }
   0x7   : > { %s30_s17 = sadd.s32 1, %s664_s13  ;;  %s39_s18 = sadd.s32 1, %s656_s11 }
   0x8   : > { %p32_p0 = scmp.ge.s32.totalorder %s30_s17, 2  ;;  %p46_p1 = scmp.ne.s32.totalorder %s656_s11, %s652_s10 }
   0x9   : > { %p47_p2 = scmp.eq.s32.totalorder %s668_s14, 0  ;;  %p52_p3 = scmp.ne.s32.totalorder %s652_s10, %s648_s9 }
   0xa   : > { %s914_s17 = smov (%p32_p0, %s30_s17), 0  ;;  %p53_p5 = scmp.eq.s32.totalorder %s467_s15, 0 }
   0xb   : > { %p729_p4 = por %p47_p2, %p46_p1  ;;  %s34_s20 = ssub.s32 %s664_s13, %s914_s17 }
   0xc   : > { %p106_p6 = scmp.eq.s32.totalorder %s467_s15, 1  ;;  %p37_p7 = scmp.eq.s32.totalorder %s34_s20, 0 }
   0xd   : > { %p735_p8 = por %p53_p5, %p52_p3  ;;  %p112_p10 = scmp.eq.s32.totalorder %s468_s16, 1 }
   0xe   : > { %p739_p9 = por %p106_p6, %p46_p1  ;;  %p494_p13 = scmp.lt.s32.totalorder %s668_s14, 2 }
   0xf   : > { %s744_s23 = scalar_select %p37_p7, %s656_s11, %s39_s18  }
  0x10   : > { %s900_s22 = scalar_select %p739_p9, 1, 0 }
  0x11   : > { %p746_p11 = por %p112_p10, %p52_p3  ;;  %s132_s25 = sand.u32 1, %s656_s11  }
  0x12   : > { %s471_s26 = sshll.u32 %s132_s25, 3  ;;  %s481_s27 = sshll.u32 %s664_s13, 7 }
  0x13   : > { %s901_s24 = scalar_select %p746_p11, 1, 0 }
  0x14   : > { %s757_s30 = scalar_lea.hbm %s894_s0, %s481_s27  ;;  %s136_s3 = scalar_lea.vmem [#allocation2], %s471_s26 }
  0x15   : > { %s146_s4 = sshll.u32 %s136_s3, 4  ;;  %p763_p0 = pnand %p494_p13, %p729_p4  ;;  %s759_s4 = int_to_ptr.vmem [resolvable:$true] %s146_s4 }
  0x16   : > { %s133_s6 = scalar_lea.sflag [#allocation3], %s132_s25  ;;  %s556_s7 = scalar_lea.hbm %s757_s30, 128 }
  0x17   : > { %p557_p3 = scmp.ne.s32.totalorder %s757_s30, %s556_s7  ;;  %p558_p5 = pneg %p763_p0 }
  0x18   : > { %s561_s16 = scalar_lea.hbm %s894_s0, 256  ;;  %p562_p4 = scmp.lt.u32.totalorder %s757_s30, %s894_s0 }
  0x19   : > { %p559_p6 = pnand %p558_p5, %p557_p3  ;;  %p563_p10 = scmp.lt.u32.totalorder %s561_s16, %s556_s7 }
  0x1a   : > { %p565_p12 = scmp.lt.u32.totalorder %s556_s7, %s757_s30 }
  0x1b   : > { %p560_p7 = pneg %p559_p6  ;;  %p564_p13 = por %p563_p10, %p562_p4 }
  0x1d   : > { %p566_p1 = por %p565_p12, %p564_p13 }
  0x1f   : > { %p567_p2 = pnand %p566_p1, %p560_p7 }
  0x21   : > { %570 = shalt.err (!%p567_p2)
}
  0x22   : > { %s571_s20 = scalar_lea.vmem %s759_s4, 128  ;;  %s670_s25 = smov [#allocation2]  }
  0x23   : > { %p572_p3 = scmp.ne.s32.totalorder %s759_s4, %s571_s20  ;;  %s576_s26 = sshll.u32 %s670_s25, 4  ;;  %s577_s26 = int_to_ptr.vmem [resolvable:$false] %s576_s26 }
  0x24   : > { %s578_s27 = scalar_lea.vmem %s577_s26, 256  ;;  %p579_p9 = scmp.lt.s32.totalorder %s759_s4, %s577_s26 }
  0x25   : > { %p574_p6 = pnand %p572_p3, %p558_p5  ;;  %p580_p4 = scmp.lt.s32.totalorder %s578_s27, %s571_s20 }
  0x27   : > { %p575_p11 = pneg %p574_p6  ;;  %p581_p10 = por %p580_p4, %p579_p9 }
  0x29   : > { %p582_p12 = pnand %p581_p10, %p575_p11 }
  0x2b   : > { %585 = shalt.err (!%p582_p12)
}
  0x2c   : > { %489 = dma.hbm_to_vmem [thread:$0]  (!%p763_p0), %s757_s30, 128, %s759_s4, %s133_s6  }
  0x2d   : > { %p903_p1 = scmp.lt.s32.totalorder %s668_s14, 3  ;;  %p904_p2 = scmp.ge.s32.totalorder %s668_s14, 1 }
  0x2f   : > { %p164_p5 = pnand %p904_p2, %p903_p1 }
  0x30   : > { %s799_s28 = sand.u32 (!%p164_p5), 1, %s652_s10  }
  0x31   : > { %167 = sbr.rel (%p164_p5) target bundleno = 309 (0x135), region = 28  ;;  %s475_s29 = sshll.u32 (!%p164_p5), %s799_s28, 3 }
  0x32   : > { %s170_s3 = scalar_lea.sflag (!%p164_p5), [#allocation3], %s799_s28  ;;  %s173_s7 = scalar_lea.vmem (!%p164_p5), [#allocation2], %s475_s29 }
  0x38   : > { %639 = dma.done.wait (%p735_p8), %s170_s3, 128  }
  0x39   : > { %641 = vsyncadd (%p735_p8), %s170_s3, 4294967168  ;;  %p203_p9 = scmp.lt.s32.totalorder %s660_s12, 1  ;;  %vm220_vm0 = vcmask 1043456   ;;  %v211_v0 = vld [vmem:[%s173_s7] sm:$0xff]  ;;  %v263_v11 = vlaneseq  ;;  %vm332_vm4 = vcmask 1040384   ;;  %vm338_vm5 = vcmask 0  }
  0x3a   : > { %v218_v2 = vcombine.high %v211_v0, %v211_v0  ;;  %v221_v3 = vsel %vm220_vm0, %v211_v0, -inf  ;;  %s478_s21 = sshll.u32 %s660_s12, 4  ;;  %s200_s15 = scalar_lea.vmem [#allocation5], %s799_s28  ;;  %vm358_vm6 = vcmask 8200  }
  0x3b   : > { %s204_s30 = scalar_select %p203_p9, %s660_s12, 1  ;;  %v222_v4 = vrot.slane %v221_v3, 4  ;;  %v264_v17 = vshrl.u32 %v263_v11, 7 }
  0x3c   : > { %v228_v5 = vsel %vm220_vm0, %v218_v2, -inf  ;;  %s374_s16 = sshll.u32 %s200_s15, 4  ;;  %s845_s20 = scalar_lea.hbm %s896_s2, %s478_s21  ;;  %s847_s16 = int_to_ptr.vmem [resolvable:$true] %s374_s16 }
  0x3d   : > { %s476_s4 = sshll.u32 %s204_s30, 1  ;;  %v223_v7 = vmax.f32 %v221_v3, %v222_v4  ;;  %v229_v8 = vrot.slane %v228_v5, 4  ;;  %v817_v21 = vsub.s32 0, %v264_v17  ;;  %v822_v24 = vsub.s32 4, %v264_v17  ;;  %s361_s25 = scalar_lea.sflag [#allocation4], %s799_s28 }
  0x3e   : > { %s209_s8 = scalar_lea.vmem %s895_s1, %s476_s4  ;;  %s586_s26 = scalar_lea.vmem %s847_s16, 16 }
  0x3f   : > { %v212_v1 = vld [vmem:[%s209_s8] sm:$0x3]  ;;  %v224_v9 = vrot.slane %v223_v7, 2  ;;  %v230_v10 = vmax.f32 %v228_v5, %v229_v8  ;;  %p587_p8 = scmp.ne.s32.totalorder %s847_s16, %s586_s26  ;;  %p905_p11 = scmp.ne.s32.totalorder %s900_s22, 0 }
  0x40   : > { %v213_v6 = vunpack.c.0.s8 %v212_v1  ;;  %s672_s12 = smov [#allocation5]  }
  0x41   : > { %v225_v13 = vmax.f32 %v223_v7, %v224_v9  ;;  %v231_v14 = vrot.slane %v230_v10, 2  ;;  %p588_p0 = pnand %p587_p8, %p905_p11  ;;  %s590_s27 = sshll.u32 %s672_s12, 4  ;;  %s591_s27 = int_to_ptr.vmem [resolvable:$false] %s590_s27 }
  0x42   : > { %v814_v12 = vand.u32 255, %v213_v6  ;;  %s592_s29 = scalar_lea.vmem %s591_s27, 32  ;;  %p593_p13 = scmp.lt.s32.totalorder %s847_s16, %s591_s27 }
  0x43   : > { %v226_v15 = vrot.slane %v225_v13, 1  ;;  %v232_v16 = vmax.f32 %v230_v10, %v231_v14  ;;  %p589_p7 = pneg %p588_p0  ;;  %p594_p3 = scmp.lt.s32.totalorder %s592_s29, %s586_s26 }
  0x44   : > { %vm215_vm1 = vcmp.ne.s32.totalorder %v814_v12, 255 }
  0x45   : > { %v227_v18 = vmax.f32 %v225_v13, %v226_v15  ;;  %v233_v19 = vrot.slane %v232_v16, 1  ;;  %v216_v22 = vsel %vm215_vm1, %v814_v12, 0  ;;  %p595_p6 = por %p594_p3, %p593_p13 }
  0x46   : > { %v268_v26 = vrot.slane %v216_v22, %v817_v21  ;;  %v272_v28 = vrot.slane %v216_v22, %v822_v24 }
  0x47   : > { %v234_v20 = vmax.f32 %v232_v16, %v233_v19  ;;  %v671_v19 = vmov 0.0   ;;  %p596_p4 = pnand %p595_p6, %p589_p7 }
  0x48   : > { %v276_v29 = vrot.slane %v268_v26, %v817_v21  ;;  %v280_v30 = vrot.slane %v272_v28, %v817_v21 }
  0x49   : > { %v237_v23 = vcombine.low %v227_v18, %v234_v20  ;;  %v477_v20 = vsel %vm215_vm1, 1.0, %v671_v19 }
  0x4a   : > { %vm281_vm2 = vcmp.eq.s32.totalorder %v264_v17, %v276_v29  ;;  %vm282_vm3 = vcmp.eq.s32.totalorder %v264_v17, %v280_v30 }
  0x4b   : > { %v239_v25 = vsub.f32 %v211_v0, %v237_v23  ;;  %v346_v23 = vrot.slane %v477_v20, %v817_v21 }
  0x4d   : > { %v240_v27 = vmul.f32 1.442695, %v239_v25  ;;  %v284_v31 = vcombine.high %v239_v25, %v239_v25  ;;  %v286_v32 = vsel %vm281_vm2, %v239_v25, 0.0  ;;  %v350_v25 = vrot.slane %v477_v20, %v822_v24 }
  0x4e   : > { %v288_v35 = vsel %vm220_vm0, %v286_v32, 0.0 }
  0x4f   : > { %546 = vpow2.f32 %v240_v27  ;;  %v287_v33 = vsel %vm282_vm3, %v284_v31, 0.0  ;;  %v289_v41 = vrot.slane %v288_v35, 4  ;;  %v353_v31 = vsel %vm332_vm4, %v346_v23, 0.0 }
  0x50   : > { %v295_v39 = vsel %vm220_vm0, %v287_v33, 0.0  ;;  %v354_v32 = vsel %vm332_vm4, %v350_v25, 0.0 }
  0x51   : > { %v296_v44 = vrot.slane %v295_v39, 4  ;;  %v290_v47 = vadd.f32 %v289_v41, %v288_v35 }
  0x53   : > { %v297_v50 = vadd.f32 %v296_v44, %v295_v39  ;;  %v291_v53 = vrot.slane %v290_v47, 2 }
  0x55   : > { %v298_v56 = vrot.slane %v297_v50, 2  ;;  %v292_v58 = vadd.f32 %v291_v53, %v290_v47 }
  0x57   : > { %v299_v59 = vadd.f32 %v298_v56, %v297_v50  ;;  %v293_v60 = vrot.slane %v292_v58, 1 }
  0x59   : > { %v547_v34 = vpop.eup %546  ;;  %v300_v61 = vrot.slane %v299_v59, 1  ;;  %v294_v62 = vadd.f32 %v293_v60, %v292_v58 }
  0x5a   : > { %v243_v36 = vcombine.high %v547_v34, %v547_v34  ;;  %v245_v37 = vsel %vm220_vm0, %v547_v34, 0.0  ;;  %v355_v34 = vadd.f32 %v354_v32, %v353_v31 }
  0x5b   : > { %v246_v38 = vrot.slane %v245_v37, 4  ;;  %v301_v1 = vadd.f32 %v300_v61, %v299_v59 }
  0x5c   : > { %v252_v40 = vsel %vm220_vm0, %v243_v36, 0.0 }
  0x5d   : > { %v247_v42 = vadd.f32 %v246_v38, %v245_v37  ;;  %v253_v43 = vrot.slane %v252_v40, 4 }
  0x5f   : > { %v248_v45 = vrot.slane %v247_v42, 2  ;;  %v254_v46 = vadd.f32 %v253_v43, %v252_v40 }
  0x61   : > { %v249_v48 = vadd.f32 %v248_v45, %v247_v42  ;;  %v255_v49 = vrot.slane %v254_v46, 2 }
  0x63   : > { %v250_v51 = vrot.slane %v249_v48, 1  ;;  %v256_v52 = vadd.f32 %v255_v49, %v254_v46 }
  0x65   : > { %v251_v54 = vadd.f32 %v250_v51, %v249_v48  ;;  %v257_v55 = vrot.slane %v256_v52, 1 }
  0x67   : > { %v258_v57 = vadd.f32 %v257_v55, %v256_v52  ;;  %548 = vlog2.f32 %v251_v54 }
  0x69   : > { %550 = vlog2.f32 %v258_v57 }
  0x71   : > { %v549_v63 = vpop.eup %548 }
  0x72   : > { %v260_v0 = vmul.f32 0.6931472, %v549_v63 }
  0x73   : > { %v551_v2 = vpop.eup %550 }
  0x74   : > { %v262_v3 = vmul.f32 0.6931472, %v551_v2  ;;  %v302_v4 = vsub.f32 %v294_v62, %v260_v0 }
  0x76   : > { %v303_v5 = vsub.f32 %v301_v1, %v262_v3  ;;  %v304_v6 = vmul.f32 1.442695, %v302_v4 }
  0x78   : > { %552 = vpow2.f32 %v304_v6  ;;  %v306_v7 = vmul.f32 1.442695, %v303_v5 }
  0x7a   : > { %554 = vpow2.f32 %v306_v7 }
  0x82   : > { %v553_v8 = vpop.eup %552 }
  0x83   : > { %v308_v9 = vsub.f32 1.0, %v553_v8 }
  0x84   : > { %v555_v10 = vpop.eup %554 }
  0x85   : > { %v309_v11 = vsub.f32 1.0, %v555_v10  ;;  %v310_v13 = vmul.f32 %v308_v9, %v308_v9 }
  0x87   : > { %v311_v14 = vmul.f32 %v309_v11, %v309_v11  ;;  %v312_v15 = vmul.f32 %v310_v13, %v302_v4 }
  0x89   : > { %v313_v16 = vmul.f32 %v311_v14, %v303_v5  ;;  %v314_v17 = vsub.f32 0.0, %v312_v15 }
  0x8b   : > { %v315_v18 = vsub.f32 0.0, %v313_v16 }
  0x8d   : > { %v318_v22 = vcombine.low %v314_v17, %v315_v18 }
  0x8f   : > { %v320_v26 = vsel %vm215_vm1, %v318_v22, 0.0 }
  0x90   : > { %v325_v27 = vrot.slane %v320_v26, %v817_v21  ;;  %v329_v28 = vrot.slane %v320_v26, %v822_v24 }
  0x92   : > { %v333_v29 = vsel %vm332_vm4, %v325_v27, 0.0  ;;  %v334_v30 = vsel %vm332_vm4, %v329_v28, 0.0 }
  0x93   : > { %v335_v33 = vadd.f32 %v334_v30, %v333_v29 }
  0x95   : > { %336 = vadd.xlane.f32.xlu0 %v335_v33 }
  0x99   : > { %356 = vadd.xlane.f32.xlu0 %v355_v34 }
 0x122   : > { %v337_v35 = vpop.xlane.xlu0 %336 }
 0x123   : > { %339 = vst.msk [vmem:[%s200_s15] sm:$0x1] %vm338_vm5, %v337_v35 }
 0x126   : > { %v357_v12 = vpop.xlane.xlu0 %356 }
 0x127   : > { %359 = vst.msk [vmem:[%s200_s15] sm:$0x1] %vm358_vm6, %v357_v12 }
 0x128   : > { %599 = shalt.err (!%p596_p4)
}
 0x129   : > { %s600_s28 = scalar_lea.hbm %s845_s20, 16  ;;  %s604_s30 = scalar_lea.hbm %s896_s2, 32 }
 0x12a   : > { %p601_p10 = scmp.ne.s32.totalorder %s845_s20, %s600_s28  ;;  %p605_p2 = scmp.lt.u32.totalorder %s845_s20, %s896_s2 }
 0x12b   : > { %p606_p5 = scmp.lt.u32.totalorder %s604_s30, %s600_s28  ;;  %p608_p8 = scmp.lt.u32.totalorder %s600_s28, %s845_s20 }
 0x12c   : > { %p602_p12 = pnand %p601_p10, %p905_p11 }
 0x12d   : > { %p607_p9 = por %p606_p5, %p605_p2 }
 0x12e   : > { %p603_p1 = pneg %p602_p12 }
 0x12f   : > { %p609_p0 = por %p608_p8, %p607_p9 }
 0x131   : > { %p610_p7 = pnand %p609_p0, %p603_p1 }
 0x133   : > { %613 = shalt.err (!%p610_p7)
}
 0x134   : > { %484 = dma.vmem_to_hbm [thread:$0]  (%p905_p11), %s847_s16, 16, %s845_s20, %s361_s25  }
 0x135 PF: > { %s386_s6 = sand.u32 1, %s648_s9   ;;  %p906_p13 = scmp.ne.s32.totalorder %s901_s24, 0 }
 0x136   : > { %p907_p3 = scmp.ge.s32.totalorder %s668_s14, 2  ;;  %s387_s8 = scalar_lea.sflag [#allocation4], %s386_s6 }
 0x138   : > { %p491_p6 = pnand %p907_p3, %p906_p13 }
 0x13a   : > { %643 = dma.done.wait (!%p491_p6), %s387_s8, 16  }
 0x13b   : > { %645 = vsyncadd (!%p491_p6), %s387_s8, 4294967280  ;;  %s18_s14 = sadd.s32 1, %s668_s14   ;;  %s908_s9 = smov %s652_s10 }
 0x13c   : > { %p15_p4 = scmp.ge.s32.totalorder %s18_s14, 4   ;;  %s909_s10 = smov %s656_s11 }
 0x13d   : > { %s910_s11 = smov %s744_s23  ;;  %s911_s12 = smov %s664_s13 }
 0x13e   : > { %s912_s13 = smov %s914_s17  ;;  %17 = sbr.rel (!%p15_p4) target bundleno = 6 (0x6), region = 76 }
 0x145   :  { %391 = vsyncpa [#allocation3], 1 }
 0x146   :  { %393 = vsyncpa [#allocation3 + $0x1], 1 }
 0x147   :  { %394 = vsyncpa [#allocation4], 1 }
 0x148   :  { %396 = vsyncpa [#allocation4 + $0x1], 1 }

</bundles_post_ra>
